<compile_context>
chip_gen: v7x
topology: tpu7x:2x2x1
jax: 0.10.0
libtpu: 0.0.40
codegen_flags: <defaults>
</compile_context>

<pallas_src>
import functools

import jax
import jax.numpy as jnp
from jax.experimental import pallas as pl
from jax.experimental.pallas import tpu as pltpu


def _pick_col_tile(C, elem_bytes, Di, Dt, N, S, budget_bytes=24 * 1024 * 1024):
    """Largest lane-aligned (multiple-of-128) column tile that divides C and whose
    double-buffered, tc-dependent working set fits the VMEM budget."""
    if C % 128 != 0:
        # TODO(synk): pad C to a multiple of 128 in the wrapper when unaligned;
        # typical diffusers dims (768 / 1024 / 1280 / 2048) are already aligned.
        return C
    # Per column of output: w_img (Di*N), b_img (N), w_txt (Dt), b_txt (1), out (N+S).
    per_col_elems = Di * N + N + Dt + 1 + (N + S)
    for cand in range(min(C, 2048), 127, -128):
        if C % cand == 0 and 2 * per_col_elems * cand * elem_bytes <= budget_bytes:
            return cand
    return 128


def _text_image_proj_kernel(img_ref, text_ref,
                            w_img_ref, b_img_ref,
                            w_txt_ref, b_txt_ref,
                            out_ref, *, num_image_text_embeds):
    N = num_image_text_embeds

    # ---- text branch (dominant matmul): (S, Dt) @ (Dt, tc) -> rows [N, N+S) ---
    txt = jnp.dot(text_ref[...], w_txt_ref[...],
                  preferred_element_type=jnp.float32)           # (S, tc)
    out_ref[N:, :] = (txt + b_txt_ref[...].astype(jnp.float32)).astype(out_ref.dtype)

    # ---- image branch: (1, Di) @ (Di, tc) per image token n -------------------
    # w_img_ref block is (Di, N, tc); slicing row n keeps everything 2-D for the
    # MXU.  N is small & static, so the Python loop fully unrolls; the results
    # are fused into a single lane-dense (N, tc) store of rows [0, N).
    img = img_ref[...]                                          # (1, Di)
    rows = [jnp.dot(img, w_img_ref[:, n, :], preferred_element_type=jnp.float32)
            for n in range(N)]                                  # N x (1, tc)
    img_rows = jnp.concatenate(rows, axis=0) if N > 1 else rows[0]   # (N, tc)
    out_ref[0:N, :] = (img_rows + b_img_ref[...].astype(jnp.float32)
                       ).astype(out_ref.dtype)


def text_image_projection(text_embeds, image_embeds,
                          w_img, b_img, w_txt, b_txt,
                          num_image_text_embeds, cross_attention_dim,
                          col_tile=None):
    """Pallas-backed forward pass of TextImageProjection.

    Args:
      text_embeds:  (B, S, text_embed_dim)
      image_embeds: (B, image_embed_dim)
      w_img: (image_embed_dim, num_image_text_embeds * cross_attention_dim)
      b_img: (num_image_text_embeds * cross_attention_dim,)
      w_txt: (text_embed_dim, cross_attention_dim)
      b_txt: (cross_attention_dim,)
      col_tile: optional override of the output column tile (must divide C and
        be 128-aligned or equal to C).
    Returns:
      (B, num_image_text_embeds + S, cross_attention_dim)
    """
    B, S, Dt = text_embeds.shape
    Bi, Di = image_embeds.shape
    N = num_image_text_embeds
    C = cross_attention_dim
    assert Bi == B
    assert w_img.shape == (Di, N * C) and b_img.shape == (N * C,)
    assert w_txt.shape == (Dt, C) and b_txt.shape == (C,)

    out_dtype = text_embeds.dtype
    w_bytes = jnp.dtype(w_img.dtype).itemsize
    act_bytes_per_elem = jnp.dtype(text_embeds.dtype).itemsize

    if col_tile is not None:
        assert C % col_tile == 0 and (col_tile == C or col_tile % 128 == 0)
        tc = col_tile
    else:
        tc = _pick_col_tile(C, w_bytes, Di, Dt, N, S)
    J = C // tc

    # Free, wrapper-side reshapes (metadata-only in HBM) — no in-kernel relayout.
    img3 = image_embeds[:, None, :]        # (B, 1, Di)
    w_img_r = w_img.reshape(Di, N, C)      # column tile j -> out[:, :N, j*tc:(j+1)*tc]
    b_img_r = b_img.reshape(N, C)
    b_txt_r = b_txt.reshape(1, C)

    # Scoped-VMEM limit derived from the actual double-buffered working set,
    # clamped to [32 MiB, 64 MiB] so it is valid on v5e/v6e/v7x alike.
    block_bytes = (Di * N + N + Dt + 1 + (N + S)) * tc * w_bytes
    act_bytes = (Di + S * Dt) * act_bytes_per_elem
    vmem_limit = int(min(64 * 1024 * 1024,
                         max(32 * 1024 * 1024,
                             2 * (block_bytes + act_bytes) + 4 * 1024 * 1024)))

    # Advisory cost estimate: weights stream once, activations re-read per
    # column tile, output written once.
    flops = 2 * B * C * (Di * N + S * Dt)
    bytes_accessed = ((Di * N * C + N * C + Dt * C + C) * w_bytes
                      + J * B * (Di + S * Dt) * act_bytes_per_elem
                      + B * (N + S) * C * jnp.dtype(out_dtype).itemsize)

    kernel = functools.partial(_text_image_proj_kernel, num_image_text_embeds=N)

    return pl.pallas_call(
        kernel,
        grid=(J, B),   # j outer: each weight column-block is DMA'd exactly once
        in_specs=[
            pl.BlockSpec((None, 1, Di), lambda j, b: (b, 0, 0)),   # image_embeds
            pl.BlockSpec((None, S, Dt), lambda j, b: (b, 0, 0)),   # text_embeds
            pl.BlockSpec((Di, N, tc),   lambda j, b: (0, 0, j)),   # w_img (tiled over C)
            pl.BlockSpec((N, tc),       lambda j, b: (0, j)),      # b_img
            pl.BlockSpec((Dt, tc),      lambda j, b: (0, j)),      # w_txt (tiled over C)
            pl.BlockSpec((1, tc),       lambda j, b: (0, j)),      # b_txt
        ],
        out_specs=pl.BlockSpec((None, N + S, tc), lambda j, b: (b, 0, j)),
        out_shape=jax.ShapeDtypeStruct((B, N + S, C), out_dtype),
        compiler_params=pltpu.CompilerParams(
            dimension_semantics=("parallel", "parallel"),
            vmem_limit_bytes=vmem_limit),
        cost_estimate=pl.CostEstimate(flops=flops, transcendentals=0,
                                      bytes_accessed=bytes_accessed),
    )(img3, text_embeds, w_img_r, b_img_r, w_txt, b_txt_r)


def _reference(text_embeds, image_embeds, w_img, b_img, w_txt, b_txt, N, C):
    """Pure-JAX reference (same math as the PyTorch forward)."""
    hp = jax.lax.Precision.HIGHEST
    B = text_embeds.shape[0]
    img = (jnp.matmul(image_embeds, w_img, precision=hp) + b_img).reshape(B, N, C)
    txt = jnp.matmul(text_embeds, w_txt, precision=hp) + b_txt
    return jnp.concatenate([img, txt], axis=1)


def _run_case(*, B, S, Dt, Di, C, N, col_tile=None, seed=0):
    key = jax.random.PRNGKey(seed)
    k1, k2, k3, k4, k5, k6 = jax.random.split(key, 6)

    text_embeds = jax.random.normal(k1, (B, S, Dt), jnp.float32)
    image_embeds = jax.random.normal(k2, (B, Di), jnp.float32)
    # PyTorch Linear weight is (out, in); we keep the transposed (in, out)
    # layout so the kernel computes x @ W + b.
    w_img = 0.02 * jax.random.normal(k3, (Di, N * C), jnp.float32)
    b_img = 0.01 * jax.random.normal(k4, (N * C,), jnp.float32)
    w_txt = 0.02 * jax.random.normal(k5, (Dt, C), jnp.float32)
    b_txt = 0.01 * jax.random.normal(k6, (C,), jnp.float32)

    fwd = jax.jit(functools.partial(
        text_image_projection,
        num_image_text_embeds=N, cross_attention_dim=C, col_tile=col_tile))
    out = jax.block_until_ready(
        fwd(text_embeds, image_embeds, w_img, b_img, w_txt, b_txt))

    ref = _reference(text_embeds, image_embeds, w_img, b_img, w_txt, b_txt, N, C)
    assert out.shape == (B, N + S, C)
    max_err = float(jnp.max(jnp.abs(out - ref)))
    assert jnp.allclose(out, ref, atol=1e-4, rtol=1e-4), max_err


if __name__ == "__main__":
    # Small unaligned config (exercises the full-extent-C fallback, tc == C).
    _run_case(B=2, S=8, Dt=32, Di=32, C=32, N=4)
    # Lane-aligned config with a forced 128-column tile (exercises the tiled
    # path with J > 1: weight streaming across j + fused per-tile stores).
    _run_case(B=2, S=8, Dt=128, Di=128, C=256, N=4, col_tile=128)
    print("KERNEL_OK")
</pallas_src>

<mosaic_0001>
module attributes {stable_mosaic.version = 11 : i64} {
  func.func @_text_image_proj_kernel(%arg0: i32, %arg1: i32, %arg2: memref<1x1x32xf32, #tpu.memory_space<vmem>>, %arg3: memref<1x8x32xf32, #tpu.memory_space<vmem>>, %arg4: memref<32x4x32xf32, #tpu.memory_space<vmem>>, %arg5: memref<4x32xf32, #tpu.memory_space<vmem>>, %arg6: memref<32x32xf32, #tpu.memory_space<vmem>>, %arg7: memref<1x32xf32, #tpu.memory_space<vmem>>, %arg8: memref<1x12x32xf32, #tpu.memory_space<vmem>>) attributes {dimension_semantics = [#tpu.dimension_semantics<parallel>, #tpu.dimension_semantics<parallel>], iteration_bounds = array<i64: 1, 2>, scalar_prefetch = 0 : i64, scratch_operands = 0 : i64, tpu.core_type = #tpu.core_type<tc>, window_params = [{transform_indices = @transform_0, window_bounds = array<i64: 1, 1, 32>}, {transform_indices = @transform_1, window_bounds = array<i64: 1, 8, 32>}, {transform_indices = @transform_2, window_bounds = array<i64: 32, 4, 32>}, {transform_indices = @transform_3, window_bounds = array<i64: 4, 32>}, {transform_indices = @transform_4, window_bounds = array<i64: 32, 32>}, {transform_indices = @transform_5, window_bounds = array<i64: 1, 32>}, {transform_indices = @transform_6, window_bounds = array<i64: 1, 12, 32>}]} {
    %c0 = arith.constant 0 : index
    %c0_0 = arith.constant 0 : index
    %c0_1 = arith.constant 0 : index
    %0 = vector.load %arg3[%c0, %c0_0, %c0_1] : memref<1x8x32xf32, #tpu.memory_space<vmem>>, vector<1x8x32xf32>
    %1 = vector.shape_cast %0 : vector<1x8x32xf32> to vector<8x32xf32>
    %c0_2 = arith.constant 0 : index
    %c0_3 = arith.constant 0 : index
    %2 = vector.load %arg6[%c0_2, %c0_3] : memref<32x32xf32, #tpu.memory_space<vmem>>, vector<32x32xf32>
    %cst = arith.constant dense<0.000000e+00> : vector<8x32xf32>
    %3 = tpu.matmul %1, %2, %cst {dimension_numbers = #tpu.dot_dimension_numbers<[1], [0], [0], [1], [0, 0, 1, 1], [], []>} : vector<8x32xf32>, vector<32x32xf32>, vector<8x32xf32> -> vector<8x32xf32>
    %c0_4 = arith.constant 0 : index
    %c0_5 = arith.constant 0 : index
    %4 = vector.load %arg7[%c0_4, %c0_5] : memref<1x32xf32, #tpu.memory_space<vmem>>, vector<1x32xf32>
    %5 = vector.broadcast %4 : vector<1x32xf32> to vector<8x32xf32>
    %6 = arith.addf %3, %5 : vector<8x32xf32>
    %c0_6 = arith.constant 0 : index
    %c4 = arith.constant 4 : index
    %c0_7 = arith.constant 0 : index
    %7 = vector.load %arg8[%c0_6, %c4, %c0_7] : memref<1x12x32xf32, #tpu.memory_space<vmem>>, vector<1x8x32xf32>
    %8 = vector.shape_cast %7 : vector<1x8x32xf32> to vector<8x32xf32>
    %9 = vector.shape_cast %6 : vector<8x32xf32> to vector<1x8x32xf32>
    tpu.vector_store %arg8[%c0_6, %c4, %c0_7], %9 {strides = array<i32>} : memref<1x12x32xf32, #tpu.memory_space<vmem>>, vector<1x8x32xf32>,
    %c0_8 = arith.constant 0 : index
    %c0_9 = arith.constant 0 : index
    %c0_10 = arith.constant 0 : index
    %10 = vector.load %arg2[%c0_8, %c0_9, %c0_10] : memref<1x1x32xf32, #tpu.memory_space<vmem>>, vector<1x1x32xf32>
    %11 = vector.shape_cast %10 : vector<1x1x32xf32> to vector<1x32xf32>
    %c0_11 = arith.constant 0 : index
    %c0_12 = arith.constant 0 : index
    %c0_13 = arith.constant 0 : index
    %12 = vector.load %arg4[%c0_11, %c0_12, %c0_13] : memref<32x4x32xf32, #tpu.memory_space<vmem>>, vector<32x1x32xf32>
    %13 = vector.shape_cast %12 : vector<32x1x32xf32> to vector<32x32xf32>
    %cst_14 = arith.constant dense<0.000000e+00> : vector<1x32xf32>
    %14 = tpu.matmul %11, %13, %cst_14 {dimension_numbers = #tpu.dot_dimension_numbers<[1], [0], [0], [1], [0, 0, 1, 1], [], []>} : vector<1x32xf32>, vector<32x32xf32>, vector<1x32xf32> -> vector<1x32xf32>
    %c0_15 = arith.constant 0 : index
    %c1 = arith.constant 1 : index
    %c0_16 = arith.constant 0 : index
    %15 = vector.load %arg4[%c0_15, %c1, %c0_16] : memref<32x4x32xf32, #tpu.memory_space<vmem>>, vector<32x1x32xf32>
    %16 = vector.shape_cast %15 : vector<32x1x32xf32> to vector<32x32xf32>
    %cst_17 = arith.constant dense<0.000000e+00> : vector<1x32xf32>
    %17 = tpu.matmul %11, %16, %cst_17 {dimension_numbers = #tpu.dot_dimension_numbers<[1], [0], [0], [1], [0, 0, 1, 1], [], []>} : vector<1x32xf32>, vector<32x32xf32>, vector<1x32xf32> -> vector<1x32xf32>
    %c0_18 = arith.constant 0 : index
    %c2 = arith.constant 2 : index
    %c0_19 = arith.constant 0 : index
    %18 = vector.load %arg4[%c0_18, %c2, %c0_19] : memref<32x4x32xf32, #tpu.memory_space<vmem>>, vector<32x1x32xf32>
    %19 = vector.shape_cast %18 : vector<32x1x32xf32> to vector<32x32xf32>
    %cst_20 = arith.constant dense<0.000000e+00> : vector<1x32xf32>
    %20 = tpu.matmul %11, %19, %cst_20 {dimension_numbers = #tpu.dot_dimension_numbers<[1], [0], [0], [1], [0, 0, 1, 1], [], []>} : vector<1x32xf32>, vector<32x32xf32>, vector<1x32xf32> -> vector<1x32xf32>
    %c0_21 = arith.constant 0 : index
    %c3 = arith.constant 3 : index
    %c0_22 = arith.constant 0 : index
    %21 = vector.load %arg4[%c0_21, %c3, %c0_22] : memref<32x4x32xf32, #tpu.memory_space<vmem>>, vector<32x1x32xf32>
    %22 = vector.shape_cast %21 : vector<32x1x32xf32> to vector<32x32xf32>
    %cst_23 = arith.constant dense<0.000000e+00> : vector<1x32xf32>
    %23 = tpu.matmul %11, %22, %cst_23 {dimension_numbers = #tpu.dot_dimension_numbers<[1], [0], [0], [1], [0, 0, 1, 1], [], []>} : vector<1x32xf32>, vector<32x32xf32>, vector<1x32xf32> -> vector<1x32xf32>
    %24 = tpu.concatenate %14, %17, %20, %23 in 0 : vector<1x32xf32>, vector<1x32xf32>, vector<1x32xf32>, vector<1x32xf32> -> vector<4x32xf32>
    %c0_24 = arith.constant 0 : index
    %c0_25 = arith.constant 0 : index
    %25 = vector.load %arg5[%c0_24, %c0_25] : memref<4x32xf32, #tpu.memory_space<vmem>>, vector<4x32xf32>
    %26 = arith.addf %24, %25 : vector<4x32xf32>
    %c0_26 = arith.constant 0 : index
    %c0_27 = arith.constant 0 : index
    %c0_28 = arith.constant 0 : index
    %27 = vector.load %arg8[%c0_26, %c0_27, %c0_28] : memref<1x12x32xf32, #tpu.memory_space<vmem>>, vector<1x4x32xf32>
    %28 = vector.shape_cast %27 : vector<1x4x32xf32> to vector<4x32xf32>
    %29 = vector.shape_cast %26 : vector<4x32xf32> to vector<1x4x32xf32>
    tpu.vector_store %arg8[%c0_26, %c0_27, %c0_28], %29 {strides = array<i32>} : memref<1x12x32xf32, #tpu.memory_space<vmem>>, vector<1x4x32xf32>,
    return
  }
  func.func @transform_0(%arg0: i32, %arg1: i32) -> (i32, i32, i32) {
    %c0_i32 = arith.constant 0 : i32
    %c0_i32_0 = arith.constant 0 : i32
    %c0_i32_1 = arith.constant 0 : i32
    return %arg1, %c0_i32, %c0_i32_0 : i32, i32, i32
  }
  func.func @transform_1(%arg0: i32, %arg1: i32) -> (i32, i32, i32) {
    %c0_i32 = arith.constant 0 : i32
    %c0_i32_0 = arith.constant 0 : i32
    %c0_i32_1 = arith.constant 0 : i32
    return %arg1, %c0_i32, %c0_i32_0 : i32, i32, i32
  }
  func.func @transform_2(%arg0: i32, %arg1: i32) -> (i32, i32, i32) {
    %c0_i32 = arith.constant 0 : i32
    %c0_i32_0 = arith.constant 0 : i32
    %c0_i32_1 = arith.constant 0 : i32
    return %c0_i32, %c0_i32_0, %arg0 : i32, i32, i32
  }
  func.func @transform_3(%arg0: i32, %arg1: i32) -> (i32, i32) {
    %c0_i32 = arith.constant 0 : i32
    %c0_i32_0 = arith.constant 0 : i32
    return %c0_i32, %arg0 : i32, i32
  }
  func.func @transform_4(%arg0: i32, %arg1: i32) -> (i32, i32) {
    %c0_i32 = arith.constant 0 : i32
    %c0_i32_0 = arith.constant 0 : i32
    return %c0_i32, %arg0 : i32, i32
  }
  func.func @transform_5(%arg0: i32, %arg1: i32) -> (i32, i32) {
    %c0_i32 = arith.constant 0 : i32
    %c0_i32_0 = arith.constant 0 : i32
    return %c0_i32, %arg0 : i32, i32
  }
  func.func @transform_6(%arg0: i32, %arg1: i32) -> (i32, i32, i32) {
    %c0_i32 = arith.constant 0 : i32
    %c0_i32_0 = arith.constant 0 : i32
    return %arg1, %c0_i32, %arg0 : i32, i32, i32
  }
}

</mosaic_0001>

<bundles_post_ra>
// kernel: text_image_projection.1
= control target key start
LH: loop header
LB: loop body
LE: loop exit
PB: predicated region body
PF: predicated region fallthrough
CT: control target
= control target key end

     0   :  { %s1605_s21 = smov 0   ;;  %s1607_s22 = smov 0   ;;  %s2192_s0 = inlined_call_operand.vmem [shape: f32[2,1,32], index: 0, kind: input, shape index: {}]   ;;  %s2193_s1 = inlined_call_operand.vmem [shape: f32[2,8,32], index: 1, kind: input, shape index: {}]   ;;  %s2194_s2 = inlined_call_operand.vmem [shape: f32[32,4,32], index: 2, kind: input, shape index: {}]   ;;  %s2195_s3 = inlined_call_operand.vmem [shape: f32[4,32], index: 3, kind: input, shape index: {}]   ;;  %s2196_s4 = inlined_call_operand.vmem [shape: f32[32,32], index: 4, kind: input, shape index: {}]   ;;  %s2197_s5 = inlined_call_operand.vmem [shape: f32[1,32], index: 5, kind: input, shape index: {}]   ;;  %s2198_s6 = inlined_call_operand.vmem [shape: f32[2,12,32], index: 6, kind: output, shape index: {}]  }
   0x1   :  { %s1609_s23 = smov 0  }
   0x2 LB: > { %s25_s24 = sadd.s32 1, %s1561_s22  ;;  %p1393_p0 = scmp.ge.s32.totalorder %s1565_s23, 1  ;;  %s1565_s23 = sphi %s1609_s23, %s16_s23   ;;  %s1561_s22 = sphi %s1607_s22, %s2200_s22   ;;  %s1557_s21 = sphi %s1605_s21, %s2199_s21  }
   0x3   : > { %p26_p1 = scmp.ge.s32.totalorder %s25_s24, 2  ;;  %p268_p2 = scmp.lt.s32.totalorder %s1565_s23, 3 }
   0x5   : > { %s2202_s24 = smov (%p26_p1, %s25_s24), 0  ;;  %p269_p3 = pnand %p1393_p0, %p268_p2 }
   0x6   : > { %v349_v0 = vld [vmem:[%s2196_s4] sm:$0xff] (!%p269_p3)  ;;  %v350_v1 = vld [vmem:[%s2196_s4 + $0x8] sm:$0xff] (!%p269_p3)  ;;  %v351_v2 = vld [vmem:[%s2196_s4 + $0x10] sm:$0xff] (!%p269_p3)  ;;  %v1567_v3 = vmov (!%p269_p3), 0.0|0.0   ;;  %vm1568_vm0 = vmmov (!%p269_p3), 0   ;;  %v1569_v6 = vmov (!%p269_p3), 0.0  }
   0x7   : > { %272 = sbr.rel (%p269_p3) target bundleno = 304 (0x130), region = 44  ;;  %1486 = vmatprep.subr.bf16.mxu0 (!%p269_p3), %v1567_v3  ;;  %v1487_v4 = vpack.c.bf16 (!%p269_p3), %v350_v1, %v349_v0  ;;  %v352_v5 = vld [vmem:[%s2196_s4 + $0x18] sm:$0xff] (!%p269_p3)  ;;  %1439 = vmatprep.mubr.msk.f32.mxu0 (!%p269_p3), %vm1568_vm0, %v1569_v6  ;;  %p318_p4 = scmp.lt.s32.totalorder (!%p269_p3), %s1557_s21, 1  ;;  %v436_v7 = vld [vmem:[%s2194_s2] sm:$0x1] (!%p269_p3)  ;;  %vm501_vm1 = vcmask (!%p269_p3), 1041409  }
   0x8   : > { %1492 = vmatprep.subr.bf16.mxu1 (!%p269_p3), %v1567_v3  ;;  %v437_v8 = vld [vmem:[%s2194_s2 + $0x4] sm:$0x1] (!%p269_p3)  ;;  %v438_v9 = vld [vmem:[%s2194_s2 + $0x8] sm:$0x1] (!%p269_p3)  ;;  %1450 = vmatprep.mubr.msk.f32.mxu1 (!%p269_p3), %vm1568_vm0, %v1569_v6  ;;  %v1490_v10 = vpack.c.bf16 (!%p269_p3), %v352_v5, %v351_v2  ;;  %vm360_vm2 = vcmask (!%p269_p3), 261120   ;;  %vm504_vm3 = vcmask (!%p269_p3), 1042434  }
   0x9   : > { %1488 = vmatpush3.bf16.msra.mxu0 (!%p269_p3), %v1487_v4  ;;  %v500_v11 = vrot.slane (!%p269_p3), %v437_v8, 7  ;;  %v439_v12 = vld [vmem:[%s2194_s2 + $0xc] sm:$0x1] (!%p269_p3)  ;;  %v440_v13 = vld [vmem:[%s2194_s2 + $0x10] sm:$0x1] (!%p269_p3)  ;;  %v503_v15 = vrot.slane (!%p269_p3), %v438_v9, 6 }
   0xa   : > { %1489 = vmatprep.subr.bf16.mxu0 (!%p269_p3), %v1567_v3  ;;  %v441_v16 = vld [vmem:[%s2194_s2 + $0x14] sm:$0x1] (!%p269_p3)  ;;  %v442_v17 = vld [vmem:[%s2194_s2 + $0x18] sm:$0x1] (!%p269_p3)  ;;  %v445_v18 = vld [vmem:[%s2194_s2 + $0x24] sm:$0x1] (!%p269_p3) }
   0xb   : > { %v502_v14 = vsel (!%p269_p3), %vm501_vm1, %v500_v11, %v436_v7  ;;  %v443_v20 = vld [vmem:[%s2194_s2 + $0x1c] sm:$0x1] (!%p269_p3)  ;;  %v446_v21 = vld [vmem:[%s2194_s2 + $0x28] sm:$0x1] (!%p269_p3)  ;;  %v447_v22 = vld [vmem:[%s2194_s2 + $0x2c] sm:$0x1] (!%p269_p3) }
   0xc   : > { %v444_v23 = vld [vmem:[%s2194_s2 + $0x20] sm:$0x1] (!%p269_p3)  ;;  %v448_v24 = vld [vmem:[%s2194_s2 + $0x30] sm:$0x1] (!%p269_p3)  ;;  %v505_v25 = vsel (!%p269_p3), %vm504_vm3, %v503_v15, %v502_v14  ;;  %v506_v26 = vrot.slane (!%p269_p3), %v439_v12, 5  ;;  %vm507_vm4 = vcmask (!%p269_p3), 1043459  }
   0xd   : > { %1491 = vmatpush3.bf16.msra.mxu0 (!%p269_p3), %v1490_v10  ;;  %v509_v27 = vrot.slane (!%p269_p3), %v440_v13, 4  ;;  %v449_v28 = vld [vmem:[%s2194_s2 + $0x34] sm:$0x1] (!%p269_p3)  ;;  %vm510_vm5 = vcmask (!%p269_p3), 1044484   ;;  %v512_v29 = vrot.slane (!%p269_p3), %v441_v16, 3  ;;  %vm513_vm6 = vcmask (!%p269_p3), 1045509  }
   0xe   : > { %s2204_s21 = smov (!%p318_p4, %s1557_s21), 1  ;;  %1498 = vmatprep.subr.bf16.mxu0 %v1567_v3  ;;  %v515_v30 = vrot.slane %v442_v17, 2  ;;  %v450_v31 = vld [vmem:[%s2194_s2 + $0x38] sm:$0x1]  ;;  %v508_v32 = vsel %vm507_vm4, %v506_v26, %v505_v25  ;;  %vm516_vm7 = vcmask 1046534   ;;  %v521_v36 = vrot.slane %v445_v18, 7 }
   0xf   : > { %s1394_s15 = sshll.u32 %s2204_s21, 3  ;;  %v641_v33 = vld [vmem:[%s2194_s2 + $0x5] sm:$0x1]  ;;  %v451_v34 = vld [vmem:[%s2194_s2 + $0x3c] sm:$0x1]  ;;  %v511_v35 = vsel %vm510_vm5, %v509_v27, %v508_v32  ;;  %v523_v37 = vrot.slane %v446_v21, 6  ;;  %s320_s19 = scalar_lea.vmem %s2192_s0, %s2204_s21 }
  0x10   : > { %s324_s26 = scalar_lea.vmem %s2193_s1, %s1394_s15  ;;  %v525_v38 = vrot.slane %v447_v22, 5  ;;  %v514_v39 = vsel %vm513_vm6, %v512_v29, %v511_v35  ;;  %v518_v40 = vrot.slane %v443_v20, 1  ;;  %vm519_vm8 = vcmask 1047559   ;;  %v640_v42 = vld [vmem:[%s2194_s2 + $0x1] sm:$0x1]  ;;  %s1405_s12 = sshll.u32 %s2204_s21, 4 }
  0x11   : > { %v348_v19 = vld [vmem:[%s324_s26] sm:$0xff]  ;;  %v527_v41 = vrot.slane %v448_v24, 4  ;;  %v517_v43 = vsel %vm516_vm7, %v515_v30, %v514_v39  ;;  %v522_v44 = vsel %vm501_vm1, %v521_v36, %v444_v23  ;;  %v529_v45 = vrot.slane %v449_v28, 3  ;;  %v642_v46 = vld [vmem:[%s2194_s2 + $0x9] sm:$0x1]  ;;  %s347_s17 = scalar_lea.vmem %s2198_s6, %s1405_s12 }
  0x12   : > { %1440 = vmatmul.mubr.msk.f32.vlgmr.msra.gmra.mrb[0].mxu0 %vm360_vm2, %v348_v19  ;;  %v643_v47 = vld [vmem:[%s2194_s2 + $0xd] sm:$0x1]  ;;  %v704_v48 = vrot.slane %v641_v33, 7  ;;  %v524_v49 = vsel %vm504_vm3, %v523_v37, %v522_v44  ;;  %v531_v50 = vrot.slane %v450_v31, 2  ;;  %v533_v51 = vrot.slane %v451_v34, 1 }
  0x13   : > { %1461 = vmatprep.mubr.msk.f32.mxu0 %vm1568_vm0, %v1569_v6  ;;  %v644_v52 = vld [vmem:[%s2194_s2 + $0x11] sm:$0x1]  ;;  %v645_v53 = vld [vmem:[%s2194_s2 + $0x15] sm:$0x1]  ;;  %v526_v54 = vsel %vm507_vm4, %v525_v38, %v524_v49  ;;  %v646_v55 = vld [vmem:[%s2194_s2 + $0x19] sm:$0x1]  ;;  %v520_v58 = vsel %vm519_vm8, %v518_v40, %v517_v43 }
  0x14   : > { %v647_v56 = vld [vmem:[%s2194_s2 + $0x1d] sm:$0x1]  ;;  %v649_v57 = vld [vmem:[%s2194_s2 + $0x25] sm:$0x1]  ;;  %v528_v59 = vsel %vm510_vm5, %v527_v41, %v526_v54  ;;  %v648_v60 = vld [vmem:[%s2194_s2 + $0x21] sm:$0x1]  ;;  %v705_v0 = vsel %vm501_vm1, %v704_v48, %v640_v42 }
  0x15   : > { %v650_v61 = vld [vmem:[%s2194_s2 + $0x29] sm:$0x1]  ;;  %v651_v62 = vld [vmem:[%s2194_s2 + $0x2d] sm:$0x1]  ;;  %v652_v63 = vld [vmem:[%s2194_s2 + $0x31] sm:$0x1]  ;;  %v530_v1 = vsel %vm513_vm6, %v529_v45, %v528_v59 }
  0x16   : > { %v653_v2 = vld [vmem:[%s2194_s2 + $0x35] sm:$0x1]  ;;  %v706_v4 = vrot.slane %v642_v46, 6  ;;  %v708_v5 = vrot.slane %v643_v47, 5  ;;  %v710_v7 = vrot.slane %v644_v52, 4  ;;  %v532_v8 = vsel %vm516_vm7, %v531_v50, %v530_v1 }
  0x17   : > { %v654_v9 = vld [vmem:[%s2194_s2 + $0x39] sm:$0x1]  ;;  %v712_v10 = vrot.slane %v645_v53, 3  ;;  %v714_v11 = vrot.slane %v646_v55, 2  ;;  %v716_v12 = vrot.slane %v647_v56, 1  ;;  %v534_v13 = vsel %vm519_vm8, %v533_v51, %v532_v8 }
  0x18   : > { %v655_v14 = vld [vmem:[%s2194_s2 + $0x3d] sm:$0x1]  ;;  %v707_v15 = vsel %vm504_vm3, %v706_v4, %v705_v0  ;;  %v718_v16 = vrot.slane %v649_v57, 7  ;;  %v720_v17 = vrot.slane %v650_v61, 6  ;;  %v453_v18 = vld [vmem:[%s2194_s2 + $0x44] sm:$0x1]  ;;  %v1493_v19 = vpack.c.bf16 %v534_v13, %v520_v58 }
  0x19   : > { %v709_v20 = vsel %vm507_vm4, %v708_v5, %v707_v15  ;;  %v722_v21 = vrot.slane %v651_v62, 5  ;;  %v724_v22 = vrot.slane %v652_v63, 4  ;;  %v452_v23 = vld [vmem:[%s2194_s2 + $0x40] sm:$0x1]  ;;  %v454_v24 = vld [vmem:[%s2194_s2 + $0x48] sm:$0x1] }
  0x1a   : > { %v711_v25 = vsel %vm510_vm5, %v710_v7, %v709_v20  ;;  %v719_v26 = vsel %vm501_vm1, %v718_v16, %v648_v60  ;;  %v726_v27 = vrot.slane %v653_v2, 3  ;;  %v455_v28 = vld [vmem:[%s2194_s2 + $0x4c] sm:$0x1]  ;;  %v456_v29 = vld [vmem:[%s2194_s2 + $0x50] sm:$0x1]  ;;  %1494 = vmatpush3.bf16.msra.mxu1 %v1493_v19  ;;  %v728_v32 = vrot.slane %v654_v9, 2 }
  0x1b   : > { %v713_v30 = vsel %vm513_vm6, %v712_v10, %v711_v25  ;;  %v721_v31 = vsel %vm504_vm3, %v720_v17, %v719_v26  ;;  %v457_v33 = vld [vmem:[%s2194_s2 + $0x54] sm:$0x1]  ;;  %v458_v34 = vld [vmem:[%s2194_s2 + $0x58] sm:$0x1]  ;;  %v535_v35 = vrot.slane %v453_v18, 7  ;;  %v730_v38 = vrot.slane %v655_v14, 1  ;;  %1495 = vmatprep.subr.bf16.mxu1 %v1567_v3 }
  0x1c   : > { %v715_v36 = vsel %vm516_vm7, %v714_v11, %v713_v30  ;;  %v723_v37 = vsel %vm507_vm4, %v722_v21, %v721_v31  ;;  %v459_v39 = vld [vmem:[%s2194_s2 + $0x5c] sm:$0x1]  ;;  %v461_v40 = vld [vmem:[%s2194_s2 + $0x64] sm:$0x1]  ;;  %v460_v43 = vld [vmem:[%s2194_s2 + $0x60] sm:$0x1] }
  0x1d   : > { %v717_v41 = vsel %vm519_vm8, %v716_v12, %v715_v36  ;;  %v725_v42 = vsel %vm510_vm5, %v724_v22, %v723_v37  ;;  %v462_v44 = vld [vmem:[%s2194_s2 + $0x68] sm:$0x1]  ;;  %v463_v45 = vld [vmem:[%s2194_s2 + $0x6c] sm:$0x1]  ;;  %v464_v46 = vld [vmem:[%s2194_s2 + $0x70] sm:$0x1]  ;;  %v536_v47 = vsel %vm501_vm1, %v535_v35, %v452_v23 }
  0x1e   : > { %v727_v48 = vsel %vm513_vm6, %v726_v27, %v725_v42  ;;  %v465_v49 = vld [vmem:[%s2194_s2 + $0x74] sm:$0x1]  ;;  %v537_v50 = vrot.slane %v454_v24, 6  ;;  %v539_v51 = vrot.slane %v455_v28, 5  ;;  %v541_v52 = vrot.slane %v456_v29, 4 }
  0x1f   : > { %v729_v53 = vsel %vm516_vm7, %v728_v32, %v727_v48  ;;  %v466_v54 = vld [vmem:[%s2194_s2 + $0x78] sm:$0x1]  ;;  %v543_v55 = vrot.slane %v457_v33, 3  ;;  %v545_v56 = vrot.slane %v458_v34, 2  ;;  %v547_v57 = vrot.slane %v459_v39, 1 }
  0x20   : > { %v731_v58 = vsel %vm519_vm8, %v730_v38, %v729_v53  ;;  %v467_v59 = vld [vmem:[%s2194_s2 + $0x7c] sm:$0x1]  ;;  %v538_v60 = vsel %vm504_vm3, %v537_v50, %v536_v47  ;;  %v549_v61 = vrot.slane %v461_v40, 7  ;;  %v551_v62 = vrot.slane %v462_v44, 6  ;;  %v657_v63 = vld [vmem:[%s2194_s2 + $0x45] sm:$0x1] }
  0x21   : > { %v1499_v0 = vpack.c.bf16 %v731_v58, %v717_v41  ;;  %v540_v1 = vsel %vm507_vm4, %v539_v51, %v538_v60  ;;  %v553_v2 = vrot.slane %v463_v45, 5  ;;  %v555_v4 = vrot.slane %v464_v46, 4  ;;  %v656_v5 = vld [vmem:[%s2194_s2 + $0x41] sm:$0x1]  ;;  %v658_v7 = vld [vmem:[%s2194_s2 + $0x49] sm:$0x1] }
  0x22   : > { %v542_v8 = vsel %vm510_vm5, %v541_v52, %v540_v1  ;;  %v550_v9 = vsel %vm501_vm1, %v549_v61, %v460_v43  ;;  %v557_v10 = vrot.slane %v465_v49, 3  ;;  %v659_v11 = vld [vmem:[%s2194_s2 + $0x4d] sm:$0x1]  ;;  %v660_v12 = vld [vmem:[%s2194_s2 + $0x51] sm:$0x1]  ;;  %v559_v15 = vrot.slane %v466_v54, 2 }
  0x23   : > { %1500 = vmatpush3.bf16.msra.mxu0 %v1499_v0  ;;  %v544_v13 = vsel %vm513_vm6, %v543_v55, %v542_v8  ;;  %v552_v14 = vsel %vm504_vm3, %v551_v62, %v550_v9  ;;  %v661_v16 = vld [vmem:[%s2194_s2 + $0x55] sm:$0x1]  ;;  %v662_v17 = vld [vmem:[%s2194_s2 + $0x59] sm:$0x1]  ;;  %v732_v18 = vrot.slane %v657_v63, 7  ;;  %v561_v21 = vrot.slane %v467_v59, 1 }
  0x24   : > { %1501 = vmatprep.subr.bf16.mxu0 %v1567_v3  ;;  %v546_v19 = vsel %vm516_vm7, %v545_v56, %v544_v13  ;;  %v554_v20 = vsel %vm507_vm4, %v553_v2, %v552_v14  ;;  %v663_v22 = vld [vmem:[%s2194_s2 + $0x5d] sm:$0x1]  ;;  %v665_v23 = vld [vmem:[%s2194_s2 + $0x65] sm:$0x1]  ;;  %v664_v26 = vld [vmem:[%s2194_s2 + $0x61] sm:$0x1] }
  0x25   : > { %v548_v24 = vsel %vm519_vm8, %v547_v57, %v546_v19  ;;  %v556_v25 = vsel %vm510_vm5, %v555_v4, %v554_v20  ;;  %v666_v27 = vld [vmem:[%s2194_s2 + $0x69] sm:$0x1]  ;;  %v667_v28 = vld [vmem:[%s2194_s2 + $0x6d] sm:$0x1]  ;;  %v668_v29 = vld [vmem:[%s2194_s2 + $0x71] sm:$0x1]  ;;  %v733_v30 = vsel %vm501_vm1, %v732_v18, %v656_v5 }
  0x26   : > { %v558_v31 = vsel %vm513_vm6, %v557_v10, %v556_v25  ;;  %v669_v32 = vld [vmem:[%s2194_s2 + $0x75] sm:$0x1]  ;;  %v734_v33 = vrot.slane %v658_v7, 6  ;;  %v736_v34 = vrot.slane %v659_v11, 5  ;;  %v738_v35 = vrot.slane %v660_v12, 4 }
  0x27   : > { %v560_v36 = vsel %vm516_vm7, %v559_v15, %v558_v31  ;;  %v670_v37 = vld [vmem:[%s2194_s2 + $0x79] sm:$0x1]  ;;  %v740_v38 = vrot.slane %v661_v16, 3  ;;  %v742_v39 = vrot.slane %v662_v17, 2  ;;  %v744_v40 = vrot.slane %v663_v22, 1 }
  0x28   : > { %v562_v41 = vsel %vm519_vm8, %v561_v21, %v560_v36  ;;  %v671_v42 = vld [vmem:[%s2194_s2 + $0x7d] sm:$0x1]  ;;  %v735_v43 = vsel %vm504_vm3, %v734_v33, %v733_v30  ;;  %v746_v44 = vrot.slane %v665_v23, 7  ;;  %v748_v45 = vrot.slane %v666_v27, 6  ;;  %v835_v46 = vld [vmem:[%s2194_s2 + $0x6] sm:$0x1] }
  0x29   : > { %v1496_v47 = vpack.c.bf16 %v562_v41, %v548_v24  ;;  %v737_v48 = vsel %vm507_vm4, %v736_v34, %v735_v43  ;;  %v750_v49 = vrot.slane %v667_v28, 5  ;;  %v752_v50 = vrot.slane %v668_v29, 4  ;;  %v1898_v51 = vld [vmem:[%s320_s19] sm:$0x1]  ;;  %v834_v52 = vld [vmem:[%s2194_s2 + $0x2] sm:$0x1] }
  0x2a   : > { %v739_v53 = vsel %vm510_vm5, %v738_v35, %v737_v48  ;;  %v747_v54 = vsel %vm501_vm1, %v746_v44, %v664_v26  ;;  %v754_v55 = vrot.slane %v669_v32, 3  ;;  %v836_v56 = vld [vmem:[%s2194_s2 + $0xa] sm:$0x1]  ;;  %v837_v57 = vld [vmem:[%s2194_s2 + $0xe] sm:$0x1]  ;;  %v756_v60 = vrot.slane %v670_v37, 2 }
  0x2b   : > { %1497 = vmatpush3.bf16.msra.mxu1 %v1496_v47  ;;  %v741_v58 = vsel %vm513_vm6, %v740_v38, %v739_v53  ;;  %v749_v59 = vsel %vm504_vm3, %v748_v45, %v747_v54  ;;  %v838_v61 = vld [vmem:[%s2194_s2 + $0x12] sm:$0x1]  ;;  %v839_v62 = vld [vmem:[%s2194_s2 + $0x16] sm:$0x1]  ;;  %v898_v63 = vrot.slane %v835_v46, 7  ;;  %v758_v2 = vrot.slane %v671_v42, 1 }
  0x2c   : > { %v743_v0 = vsel %vm516_vm7, %v742_v39, %v741_v58  ;;  %v751_v1 = vsel %vm507_vm4, %v750_v49, %v749_v59  ;;  %1504 = vmatprep.subr.bf16.mxu1 %v1567_v3  ;;  %v840_v4 = vld [vmem:[%s2194_s2 + $0x1a] sm:$0x1]  ;;  %v841_v5 = vld [vmem:[%s2194_s2 + $0x1e] sm:$0x1]  ;;  %v842_v9 = vld [vmem:[%s2194_s2 + $0x22] sm:$0x1] }
  0x2d   : > { %v745_v7 = vsel %vm519_vm8, %v744_v40, %v743_v0  ;;  %v753_v8 = vsel %vm510_vm5, %v752_v50, %v751_v1  ;;  %v843_v10 = vld [vmem:[%s2194_s2 + $0x26] sm:$0x1]  ;;  %v844_v11 = vld [vmem:[%s2194_s2 + $0x2a] sm:$0x1]  ;;  %v845_v12 = vld [vmem:[%s2194_s2 + $0x2e] sm:$0x1]  ;;  %v899_v13 = vsel %vm501_vm1, %v898_v63, %v834_v52 }
  0x2e   : > { %v755_v14 = vsel %vm513_vm6, %v754_v55, %v753_v8  ;;  %1451 = vmatmul.mubr.msk.f32.vlgmr.msra.gmra.mrb[0].mxu1 %vm360_vm2, %v1898_v51  ;;  %v846_v15 = vld [vmem:[%s2194_s2 + $0x32] sm:$0x1]  ;;  %v900_v16 = vrot.slane %v836_v56, 6  ;;  %v902_v17 = vrot.slane %v837_v57, 5  ;;  %v904_v18 = vrot.slane %v838_v61, 4 }
  0x2f   : > { %v757_v19 = vsel %vm516_vm7, %v756_v60, %v755_v14  ;;  %v847_v20 = vld [vmem:[%s2194_s2 + $0x36] sm:$0x1]  ;;  %v906_v21 = vrot.slane %v839_v62, 3  ;;  %v908_v22 = vrot.slane %v840_v4, 2  ;;  %v910_v23 = vrot.slane %v841_v5, 1  ;;  %1472 = vmatprep.mubr.msk.f32.mxu1 %vm1568_vm0, %v1569_v6 }
  0x30   : > { %v759_v24 = vsel %vm519_vm8, %v758_v2, %v757_v19  ;;  %v848_v25 = vld [vmem:[%s2194_s2 + $0x3a] sm:$0x1]  ;;  %v901_v26 = vsel %vm504_vm3, %v900_v16, %v899_v13  ;;  %v912_v27 = vrot.slane %v843_v10, 7  ;;  %v914_v28 = vrot.slane %v844_v11, 6  ;;  %v1029_v29 = vld [vmem:[%s2194_s2 + $0x7] sm:$0x1] }
  0x31   : > { %v1502_v30 = vpack.c.bf16 %v759_v24, %v745_v7  ;;  %v849_v31 = vld [vmem:[%s2194_s2 + $0x3e] sm:$0x1]  ;;  %v903_v32 = vsel %vm507_vm4, %v902_v17, %v901_v26  ;;  %v916_v33 = vrot.slane %v845_v12, 5  ;;  %v918_v34 = vrot.slane %v846_v15, 4  ;;  %v1028_v35 = vld [vmem:[%s2194_s2 + $0x3] sm:$0x1] }
  0x32   : > { %v905_v36 = vsel %vm510_vm5, %v904_v18, %v903_v32  ;;  %v913_v37 = vsel %vm501_vm1, %v912_v27, %v842_v9  ;;  %v920_v38 = vrot.slane %v847_v20, 3  ;;  %v1030_v39 = vld [vmem:[%s2194_s2 + $0xb] sm:$0x1]  ;;  %v1031_v40 = vld [vmem:[%s2194_s2 + $0xf] sm:$0x1]  ;;  %v922_v43 = vrot.slane %v848_v25, 2 }
  0x33   : > { %1503 = vmatpush3.bf16.msra.mxu0 %v1502_v30  ;;  %v907_v41 = vsel %vm513_vm6, %v906_v21, %v905_v36  ;;  %v915_v42 = vsel %vm504_vm3, %v914_v28, %v913_v37  ;;  %v1032_v44 = vld [vmem:[%s2194_s2 + $0x13] sm:$0x1]  ;;  %v1033_v45 = vld [vmem:[%s2194_s2 + $0x17] sm:$0x1]  ;;  %v1092_v46 = vrot.slane %v1029_v29, 7  ;;  %v924_v49 = vrot.slane %v849_v31, 1 }
  0x34   : > { %1510 = vmatprep.subr.bf16.mxu0 %v1567_v3  ;;  %v909_v47 = vsel %vm516_vm7, %v908_v22, %v907_v41  ;;  %v917_v48 = vsel %vm507_vm4, %v916_v33, %v915_v42  ;;  %v1034_v50 = vld [vmem:[%s2194_s2 + $0x1b] sm:$0x1]  ;;  %v1035_v52 = vld [vmem:[%s2194_s2 + $0x1f] sm:$0x1]  ;;  %v1036_v55 = vld [vmem:[%s2194_s2 + $0x23] sm:$0x1] }
  0x35   : > { %v911_v53 = vsel %vm519_vm8, %v910_v23, %v909_v47  ;;  %v919_v54 = vsel %vm510_vm5, %v918_v34, %v917_v48  ;;  %v1037_v56 = vld [vmem:[%s2194_s2 + $0x27] sm:$0x1]  ;;  %v1038_v57 = vld [vmem:[%s2194_s2 + $0x2b] sm:$0x1]  ;;  %v1039_v58 = vld [vmem:[%s2194_s2 + $0x2f] sm:$0x1]  ;;  %v1093_v59 = vsel %vm501_vm1, %v1092_v46, %v1028_v35 }
  0x36   : > { %1462 = vmatmul.mubr.msk.f32.vlgmr.msra.gmra.mrb[2].mxu0 %vm360_vm2, %v1898_v51  ;;  %v921_v60 = vsel %vm513_vm6, %v920_v38, %v919_v54  ;;  %v1040_v61 = vld [vmem:[%s2194_s2 + $0x33] sm:$0x1]  ;;  %v1094_v62 = vrot.slane %v1030_v39, 6  ;;  %v1096_v63 = vrot.slane %v1031_v40, 5  ;;  %v1098_v0 = vrot.slane %v1032_v44, 4 }
  0x37   : > { %v923_v1 = vsel %vm516_vm7, %v922_v43, %v921_v60  ;;  %v1041_v2 = vld [vmem:[%s2194_s2 + $0x37] sm:$0x1]  ;;  %v1100_v4 = vrot.slane %v1033_v45, 3  ;;  %v1102_v5 = vrot.slane %v1034_v50, 2  ;;  %v1104_v7 = vrot.slane %v1035_v52, 1  ;;  %1483 = vmatprep.mubr.msk.f32.mxu0 %vm1568_vm0, %v1569_v6 }
  0x38   : > { %v925_v8 = vsel %vm519_vm8, %v924_v49, %v923_v1  ;;  %v1042_v9 = vld [vmem:[%s2194_s2 + $0x3b] sm:$0x1]  ;;  %v1095_v10 = vsel %vm504_vm3, %v1094_v62, %v1093_v59  ;;  %v1106_v11 = vrot.slane %v1037_v56, 7  ;;  %v1108_v12 = vrot.slane %v1038_v57, 6  ;;  %v851_v13 = vld [vmem:[%s2194_s2 + $0x46] sm:$0x1] }
  0x39   : > { %v1505_v14 = vpack.c.bf16 %v925_v8, %v911_v53  ;;  %v1043_v15 = vld [vmem:[%s2194_s2 + $0x3f] sm:$0x1]  ;;  %v1097_v6 = vsel %vm507_vm4, %v1096_v63, %v1095_v10  ;;  %v1110_v16 = vrot.slane %v1039_v58, 5  ;;  %v1112_v17 = vrot.slane %v1040_v61, 4  ;;  %v850_v18 = vld [vmem:[%s2194_s2 + $0x42] sm:$0x1] }
  0x3a   : > { %v1099_v19 = vsel %vm510_vm5, %v1098_v0, %v1097_v6  ;;  %v1107_v20 = vsel %vm501_vm1, %v1106_v11, %v1036_v55  ;;  %v1114_v21 = vrot.slane %v1041_v2, 3  ;;  %v852_v22 = vld [vmem:[%s2194_s2 + $0x4a] sm:$0x1]  ;;  %v853_v23 = vld [vmem:[%s2194_s2 + $0x4e] sm:$0x1]  ;;  %v1116_v26 = vrot.slane %v1042_v9, 2 }
  0x3b   : > { %1506 = vmatpush3.bf16.msra.mxu1 %v1505_v14  ;;  %v1101_v24 = vsel %vm513_vm6, %v1100_v4, %v1099_v19  ;;  %v1109_v25 = vsel %vm504_vm3, %v1108_v12, %v1107_v20  ;;  %v854_v27 = vld [vmem:[%s2194_s2 + $0x52] sm:$0x1]  ;;  %v855_v28 = vld [vmem:[%s2194_s2 + $0x56] sm:$0x1]  ;;  %v926_v29 = vrot.slane %v851_v13, 7  ;;  %v1118_v32 = vrot.slane %v1043_v15, 1 }
  0x3c   : > { %v1103_v30 = vsel %vm516_vm7, %v1102_v5, %v1101_v24  ;;  %v1111_v31 = vsel %vm507_vm4, %v1110_v16, %v1109_v25  ;;  %1507 = vmatprep.subr.bf16.mxu1 %v1567_v3  ;;  %v856_v33 = vld [vmem:[%s2194_s2 + $0x5a] sm:$0x1]  ;;  %v857_v34 = vld [vmem:[%s2194_s2 + $0x5e] sm:$0x1]  ;;  %v858_v37 = vld [vmem:[%s2194_s2 + $0x62] sm:$0x1] }
  0x3d   : > { %v1105_v35 = vsel %vm519_vm8, %v1104_v7, %v1103_v30  ;;  %v1113_v36 = vsel %vm510_vm5, %v1112_v17, %v1111_v31  ;;  %v859_v38 = vld [vmem:[%s2194_s2 + $0x66] sm:$0x1]  ;;  %v860_v39 = vld [vmem:[%s2194_s2 + $0x6a] sm:$0x1]  ;;  %v861_v40 = vld [vmem:[%s2194_s2 + $0x6e] sm:$0x1]  ;;  %v927_v41 = vsel %vm501_vm1, %v926_v29, %v850_v18 }
  0x3e   : > { %v1115_v42 = vsel %vm513_vm6, %v1114_v21, %v1113_v36  ;;  %v862_v43 = vld [vmem:[%s2194_s2 + $0x72] sm:$0x1]  ;;  %v928_v44 = vrot.slane %v852_v22, 6  ;;  %v930_v45 = vrot.slane %v853_v23, 5  ;;  %v932_v46 = vrot.slane %v854_v27, 4 }
  0x3f   : > { %v1117_v47 = vsel %vm516_vm7, %v1116_v26, %v1115_v42  ;;  %v863_v48 = vld [vmem:[%s2194_s2 + $0x76] sm:$0x1]  ;;  %v934_v49 = vrot.slane %v855_v28, 3  ;;  %v936_v50 = vrot.slane %v856_v33, 2  ;;  %v938_v52 = vrot.slane %v857_v34, 1 }
  0x40   : > { %v1119_v53 = vsel %vm519_vm8, %v1118_v32, %v1117_v47  ;;  %v864_v54 = vld [vmem:[%s2194_s2 + $0x7a] sm:$0x1]  ;;  %v929_v55 = vsel %vm504_vm3, %v928_v44, %v927_v41  ;;  %v940_v56 = vrot.slane %v859_v38, 7  ;;  %v942_v57 = vrot.slane %v860_v39, 6  ;;  %v1045_v58 = vld [vmem:[%s2194_s2 + $0x47] sm:$0x1] }
  0x41   : > { %v1511_v59 = vpack.c.bf16 %v1119_v53, %v1105_v35  ;;  %v865_v60 = vld [vmem:[%s2194_s2 + $0x7e] sm:$0x1]  ;;  %v931_v61 = vsel %vm507_vm4, %v930_v45, %v929_v55  ;;  %v944_v62 = vrot.slane %v861_v40, 5  ;;  %v946_v63 = vrot.slane %v862_v43, 4  ;;  %v1044_v4 = vld [vmem:[%s2194_s2 + $0x43] sm:$0x1] }
  0x42   : > { %v933_v0 = vsel %vm510_vm5, %v932_v46, %v931_v61  ;;  %v941_v1 = vsel %vm501_vm1, %v940_v56, %v858_v37  ;;  %v948_v2 = vrot.slane %v863_v48, 3  ;;  %v1046_v5 = vld [vmem:[%s2194_s2 + $0x4b] sm:$0x1]  ;;  %v950_v9 = vrot.slane %v864_v54, 2  ;;  %v1047_v10 = vld [vmem:[%s2194_s2 + $0x4f] sm:$0x1] }
  0x43   : > { %1512 = vmatpush3.bf16.msra.mxu0 %v1511_v59  ;;  %v935_v7 = vsel %vm513_vm6, %v934_v49, %v933_v0  ;;  %v943_v8 = vsel %vm504_vm3, %v942_v57, %v941_v1  ;;  %v1048_v11 = vld [vmem:[%s2194_s2 + $0x53] sm:$0x1]  ;;  %v1120_v12 = vrot.slane %v1045_v58, 7  ;;  %v952_v15 = vrot.slane %v865_v60, 1  ;;  %v1049_v6 = vld [vmem:[%s2194_s2 + $0x57] sm:$0x1] }
  0x44   : > { %1513 = vmatprep.subr.bf16.mxu0 %v1567_v3  ;;  %v937_v13 = vsel %vm516_vm7, %v936_v50, %v935_v7  ;;  %v945_v14 = vsel %vm507_vm4, %v944_v62, %v943_v8  ;;  %v1050_v16 = vld [vmem:[%s2194_s2 + $0x5b] sm:$0x1]  ;;  %v1051_v3 = vld [vmem:[%s2194_s2 + $0x5f] sm:$0x1]  ;;  %v1053_v19 = vld [vmem:[%s2194_s2 + $0x67] sm:$0x1] }
  0x45   : > { %v939_v17 = vsel %vm519_vm8, %v938_v52, %v937_v13  ;;  %v947_v18 = vsel %vm510_vm5, %v946_v63, %v945_v14  ;;  %v1054_v20 = vld [vmem:[%s2194_s2 + $0x6b] sm:$0x1]  ;;  %v1055_v21 = vld [vmem:[%s2194_s2 + $0x6f] sm:$0x1]  ;;  %v1121_v22 = vsel %vm501_vm1, %v1120_v12, %v1044_v4  ;;  %v1056_v24 = vld [vmem:[%s2194_s2 + $0x73] sm:$0x1] }
  0x46   : > { %v949_v23 = vsel %vm513_vm6, %v948_v2, %v947_v18  ;;  %v1122_v25 = vrot.slane %v1046_v5, 6  ;;  %v1124_v26 = vrot.slane %v1047_v10, 5  ;;  %v1126_v27 = vrot.slane %v1048_v11, 4  ;;  %v1052_v29 = vld [vmem:[%s2194_s2 + $0x63] sm:$0x1] }
  0x47   : > { %v951_v28 = vsel %vm516_vm7, %v950_v9, %v949_v23  ;;  %v1057_v30 = vld [vmem:[%s2194_s2 + $0x77] sm:$0x1]  ;;  %v1128_v31 = vrot.slane %v1049_v6, 3  ;;  %v1130_v32 = vrot.slane %v1050_v16, 2  ;;  %v1058_v34 = vld [vmem:[%s2194_s2 + $0x7b] sm:$0x1] }
  0x48   : > { %v953_v33 = vsel %vm519_vm8, %v952_v15, %v951_v28  ;;  %v1123_v35 = vsel %vm504_vm3, %v1122_v25, %v1121_v22  ;;  %v1134_v36 = vrot.slane %v1053_v19, 7  ;;  %v1136_v37 = vrot.slane %v1054_v20, 6  ;;  %v1059_v39 = vld [vmem:[%s2194_s2 + $0x7f] sm:$0x1]  ;;  %v1397_v60 = vld [vmem:[%s2197_s5] ss:$0 sm:$0xff] }
  0x49   : > { %v1508_v38 = vpack.c.bf16 %v953_v33, %v939_v17  ;;  %v1125_v40 = vsel %vm507_vm4, %v1124_v26, %v1123_v35  ;;  %v1138_v41 = vrot.slane %v1055_v21, 5  ;;  %v1140_v42 = vrot.slane %v1056_v24, 4  ;;  %v1237_v13 = vld [vmem:[%s2195_s3] sm:$0xf] }
  0x4a   : > { %v1127_v43 = vsel %vm510_vm5, %v1126_v27, %v1125_v40  ;;  %v1132_v44 = vrot.slane %v1051_v3, 1  ;;  %v1135_v45 = vsel %vm501_vm1, %v1134_v36, %v1052_v29  ;;  %v1142_v46 = vrot.slane %v1057_v30, 3 }
  0x4b   : > { %1509 = vmatpush3.bf16.msra.mxu1 %v1508_v38  ;;  %v1129_v47 = vsel %vm513_vm6, %v1128_v31, %v1127_v43  ;;  %v1137_v48 = vsel %vm504_vm3, %v1136_v37, %v1135_v45  ;;  %v1144_v49 = vrot.slane %v1058_v34, 2  ;;  %v1146_v53 = vrot.slane %v1059_v39, 1 }
  0x4c   : > { %v1131_v50 = vsel %vm516_vm7, %v1130_v32, %v1129_v47  ;;  %v1139_v52 = vsel %vm507_vm4, %v1138_v41, %v1137_v48  ;;  %vm1231_vm9 = vcmask 1040384   ;;  %vm1233_vm10 = vcmask 1041408  }
  0x4d   : > { %v1141_v54 = vsel %vm510_vm5, %v1140_v42, %v1139_v52  ;;  %v1133_v55 = vsel %vm519_vm8, %v1132_v44, %v1131_v50  ;;  %vm1235_vm11 = vcmask 1042432   ;;  %vm1239_vm12 = vcmask 257024  }
  0x4e   : > { %v1143_v56 = vsel %vm513_vm6, %v1142_v46, %v1141_v54  ;;  %1473 = vmatmul.mubr.msk.f32.vlgmr.msra.gmra.mrb[2].mxu1 %vm360_vm2, %v1898_v51 }
  0x4f   : > { %v1145_v57 = vsel %vm516_vm7, %v1144_v49, %v1143_v56 }
  0x50   : > { %v1147_v58 = vsel %vm519_vm8, %v1146_v53, %v1145_v57 }
  0x51   : > { %v1514_v59 = vpack.c.bf16 %v1147_v58, %v1133_v55 }
  0x53   : > { %1515 = vmatpush3.bf16.msra.mxu0 %v1514_v59 }
  0x56   : > { %1484 = vmatmul.mubr.msk.f32.vlgmr.msra.gmra.mrb[4].mxu0 %vm360_vm2, %v1898_v51 }
  0xe5   : > { %v430_v61 = vpop.f32.mrb[0].mxu0 }
  0xe6   : > { %v431_v62 = vadd.f32 %v1397_v60, %v430_v61  ;;  %v1441_v63 = vpop.f32.mrb[1].mxu0 }
  0xe8   : > { %434 = vst.msk [vmem:[%s347_s17 + $0x4] sm:$0xff] %vm360_vm2, %v431_v62 }
 0x101   : > { %v636_v0 = vpop.f32.mrb[0].mxu1 }
 0x102   : > { %v1452_v1 = vpop.f32.mrb[1].mxu1 }
 0x109   : > { %v830_v2 = vpop.f32.mrb[2].mxu0 }
 0x10a   : > { %v1223_v4 = vrot.slane %v830_v2, 7  ;;  %v1463_v51 = vpop.f32.mrb[3].mxu0 }
 0x10c   : > { %v1232_v5 = vsel %vm1231_vm9, %v636_v0, %v1223_v4 }
 0x121   : > { %v1024_v7 = vpop.f32.mrb[2].mxu1 }
 0x122   : > { %v1226_v8 = vrot.slane %v1024_v7, 6  ;;  %v1474_v9 = vpop.f32.mrb[3].mxu1 }
 0x124   : > { %v1234_v10 = vsel %vm1233_vm10, %v1232_v5, %v1226_v8 }
 0x129   : > { %v1218_v11 = vpop.f32.mrb[4].mxu0 }
 0x12a   : > { %v1229_v12 = vrot.slane %v1218_v11, 5  ;;  %v1485_v14 = vpop.f32.mrb[5].mxu0 }
 0x12c   : > { %v1236_v15 = vsel %vm1235_vm11, %v1234_v10, %v1229_v12 }
 0x12d   : > { %v1238_v6 = vadd.f32 %v1237_v13, %v1236_v15 }
 0x12f   : > { %1240 = vst.msk [vmem:[%s347_s17] sm:$0xf] %vm1239_vm12, %v1238_v6 }
 0x130 PF: > { %s16_s23 = sadd.s32 1, %s1565_s23   ;;  %s2199_s21 = smov %s1561_s22 }
 0x131   : > { %p13_p5 = scmp.ge.s32.totalorder %s16_s23, 4   ;;  %s2200_s22 = smov %s2202_s24 }
 0x133   :  { %15 = sbr.rel (!%p13_p5) target bundleno = 2 (0x2), region = 89 }

</bundles_post_ra>
